<compile_context>
chip_gen: v7x
topology: tpu7x:2x2x1
jax: 0.10.0
libtpu: 0.0.40
codegen_flags: <defaults>
</compile_context>

<pallas_src>
import functools

import jax
import jax.numpy as jnp
from jax.experimental import pallas as pl
from jax.experimental.pallas import tpu as pltpu

FC_COL_TILE = 512  # lane-dense vocab tile; fc weights are pre-padded to a multiple of this


def _round_up(x, m):
    return (x + m - 1) // m * m


# --------------------- tiled matmul + bias (final Linear) --------------------
def matmul_bias_kernel(x_ref, w_ref, b_ref, o_ref):
    o_ref[...] = (
        jnp.dot(x_ref[...], w_ref[...], preferred_element_type=jnp.float32)
        + b_ref[...]
    )


def matmul_bias(x, w, b_row, *, tile_rows=512, tile_cols=FC_COL_TILE):
    """(N, K) @ (K, V) + (1, V) -> (N, V) f32.

    Grid is (col_tiles, row_tiles) with ROWS innermost: the weight block index
    is constant across consecutive grid steps, so each (K, tile_cols) weight
    tile is DMA'd from HBM exactly once (the whole vocab weight is streamed
    once overall) while only the small bf16 activations are re-streamed.
    Operands are bf16 on the MXU; accumulation stays f32.
    """
    N, K = x.shape
    K2, V = w.shape
    assert K == K2
    x = x.astype(jnp.bfloat16)
    w = w.astype(jnp.bfloat16)
    b_row = b_row.astype(jnp.float32).reshape(1, V)

    tn = min(tile_rows, _round_up(N, 8))
    tv = min(tile_cols, _round_up(V, 128))
    Np = _round_up(N, tn)
    Vp = _round_up(V, tv)
    if Np != N:
        x = jnp.pad(x, ((0, Np - N), (0, 0)))
    if Vp != V:  # no-op when the weight was pre-padded at init time
        w = jnp.pad(w, ((0, 0), (0, Vp - V)))
        b_row = jnp.pad(b_row, ((0, 0), (0, Vp - V)))

    grid = (Vp // tv, Np // tn)  # rows innermost -> weight tile stays resident
    cost = pl.CostEstimate(
        flops=2 * Np * K * Vp,
        transcendentals=0,
        bytes_accessed=(grid[0] * Np * K * 2   # x re-streamed once per column tile
                        + K * Vp * 2           # vocab weight streamed once
                        + Vp * 4               # bias
                        + Np * Vp * 4),        # f32 logits writeback
    )
    out = pl.pallas_call(
        matmul_bias_kernel,
        out_shape=jax.ShapeDtypeStruct((Np, Vp), jnp.float32),
        grid=grid,
        in_specs=[
            pl.BlockSpec((tn, K), lambda j, i: (i, 0)),
            pl.BlockSpec((K, tv), lambda j, i: (0, j)),
            pl.BlockSpec((1, tv), lambda j, i: (0, j)),
        ],
        out_specs=pl.BlockSpec((tn, tv), lambda j, i: (i, j)),
        compiler_params=pltpu.CompilerParams(
            dimension_semantics=("parallel", "parallel"),
            vmem_limit_bytes=48 * 1024 * 1024,
        ),
        cost_estimate=cost,
    )(x, w, b_row)
    return out[:N, :V]


# ------------------ fused z-projection + stacked-LSTM kernel -----------------
def lstm_stack_kernel(z_ref, w_ih0_ref, b0_ref, w_ih_ref, w_hh_ref, b_ref,
                      out_ref, h_ref, c_ref):
    """Whole sequence of the WHOLE LSTM stack for one batch block.

    z_ref      : (bb, latent)   f32   latent code (time-invariant input)
    w_ih0_ref  : (latent, 4H)   bf16  layer-0 input weights (pre-transposed)
    b0_ref     : (1, 4H)        f32   layer-0 combined bias
    w_ih_ref   : (L-1, H, 4H)   bf16  input weights, layers 1..L-1
    w_hh_ref   : (L, H, 4H)     bf16  recurrent weights, all layers
    b_ref      : (L-1, 1, 4H)   f32   combined biases, layers 1..L-1
    out_ref    : (T, bb, H)     bf16  last layer's hidden state per timestep
    h_ref/c_ref: (L, bb, H)     f32   VMEM state, one slot per layer
    """
    num_layers, H, four_h = w_hh_ref.shape
    seq_len, bb, _ = out_ref.shape

    # h0 = c0 = 0 (nn.LSTM default).  Unconditional, so state never leaks
    # across batch blocks regardless of grid ordering / megacore split.
    h_ref[...] = jnp.zeros_like(h_ref)
    c_ref[...] = jnp.zeros_like(c_ref)

    # Layer-0 input projection: z is repeated over time, so compute it ONCE.
    x0_gates = jnp.broadcast_to(b0_ref[...], (bb, four_h)) + jnp.dot(
        z_ref[...].astype(jnp.bfloat16), w_ih0_ref[...],
        preferred_element_type=jnp.float32)

    # Hoist (1,4H)->(bb,4H) bias broadcasts for layers >= 1 out of the time
    # loop (JAX does not CSE broadcast_in_dim).
    b_bcast = [jnp.broadcast_to(b_ref[layer], (bb, four_h))
               for layer in range(num_layers - 1)]

    def step(t, carry):
        x_gates = x0_gates
        h_last = None
        for layer in range(num_layers):          # small static unroll over layers
            h_prev = h_ref[layer]                # (bb, H) f32
            c_prev = c_ref[layer]
            gates = x_gates + jnp.dot(
                h_prev.astype(jnp.bfloat16), w_hh_ref[layer],
                preferred_element_type=jnp.float32)           # (bb, 4H) f32
            i_g = jax.nn.sigmoid(gates[:, 0 * H:1 * H])
            f_g = jax.nn.sigmoid(gates[:, 1 * H:2 * H])
            g_g = jnp.tanh(gates[:, 2 * H:3 * H])
            o_g = jax.nn.sigmoid(gates[:, 3 * H:4 * H])
            c_new = f_g * c_prev + i_g * g_g
            h_new = o_g * jnp.tanh(c_new)
            c_ref[layer] = c_new
            h_ref[layer] = h_new
            h_last = h_new
            if layer + 1 < num_layers:
                # Next layer's input projection depends on THIS layer's output
                # at the same timestep -> must live inside the fused time loop.
                x_gates = b_bcast[layer] + jnp.dot(
                    h_new.astype(jnp.bfloat16), w_ih_ref[layer],
                    preferred_element_type=jnp.float32)
        out_ref[t] = h_last.astype(out_ref.dtype)
        return carry

    jax.lax.fori_loop(0, seq_len, step, 0)


def run_lstm_stack(z, w_ih0, b0, w_ih_rest, w_hh, b_rest, seq_len,
                   *, num_batch_blocks=1):
    """z: (B, latent) f32 -> (T, B, H) bf16 (time-major last-layer hidden states)."""
    B, latent = z.shape
    L, H, four_h = w_hh.shape
    Lm1 = w_ih_rest.shape[0]
    assert B % num_batch_blocks == 0
    bb = B // num_batch_blocks

    # Constant-index weights: single-buffered (DMA'd once, never change).
    w_mode = pl.Buffered(1)

    return pl.pallas_call(
        lstm_stack_kernel,
        out_shape=jax.ShapeDtypeStruct((seq_len, B, H), jnp.bfloat16),
        grid_spec=pltpu.PrefetchScalarGridSpec(
            num_scalar_prefetch=0,
            grid=(num_batch_blocks,),
            in_specs=[
                pl.BlockSpec((bb, latent), lambda b: (b, 0)),
                pl.BlockSpec((latent, four_h), lambda b: (0, 0),
                             pipeline_mode=w_mode),
                pl.BlockSpec((1, four_h), lambda b: (0, 0),
                             pipeline_mode=w_mode),
                pl.BlockSpec((Lm1, H, four_h), lambda b: (0, 0, 0),
                             pipeline_mode=w_mode),
                pl.BlockSpec((L, H, four_h), lambda b: (0, 0, 0),
                             pipeline_mode=w_mode),
                pl.BlockSpec((Lm1, 1, four_h), lambda b: (0, 0, 0),
                             pipeline_mode=w_mode),
            ],
            out_specs=pl.BlockSpec((seq_len, bb, H), lambda b: (0, b, 0)),
            scratch_shapes=[
                pltpu.VMEM((L, bb, H), jnp.float32),   # h for every layer
                pltpu.VMEM((L, bb, H), jnp.float32),   # c for every layer
            ],
        ),
        compiler_params=pltpu.CompilerParams(
            dimension_semantics=("parallel",),     # batch blocks are independent
            vmem_limit_bytes=48 * 1024 * 1024,
        ),
    )(z, w_ih0, b0, w_ih_rest, w_hh, b_rest)


# --------------------------------- VAEDecoder --------------------------------
def init_params(key, latent_dim, intermediate_dim, vocab_size, num_layers):
    """PyTorch-style uniform init; weights pre-transposed, bf16 for the MXU."""
    H = intermediate_dim
    k = 1.0 / jnp.sqrt(jnp.float32(H))
    w_ih0 = b0 = None
    w_ih_rest, w_hh_all, b_rest = [], [], []
    for layer in range(num_layers):
        d_in = latent_dim if layer == 0 else H
        key, k1, k2, k3, k4 = jax.random.split(key, 5)
        w_ih = jax.random.uniform(k1, (4 * H, d_in), jnp.float32, -k, k)
        w_hh = jax.random.uniform(k2, (4 * H, H), jnp.float32, -k, k)
        b_ih = jax.random.uniform(k3, (4 * H,), jnp.float32, -k, k)
        b_hh = jax.random.uniform(k4, (4 * H,), jnp.float32, -k, k)
        b_sum = (b_ih + b_hh).reshape(1, 4 * H)
        w_hh_all.append(w_hh.T.astype(jnp.bfloat16))              # (H, 4H)
        if layer == 0:
            w_ih0 = w_ih.T.astype(jnp.bfloat16)                   # (latent, 4H)
            b0 = b_sum                                            # (1, 4H) f32
        else:
            w_ih_rest.append(w_ih.T.astype(jnp.bfloat16))         # (H, 4H)
            b_rest.append(b_sum.reshape(1, 1, 4 * H))
    if w_ih_rest:
        w_ih_rest = jnp.stack(w_ih_rest)                          # (L-1, H, 4H)
        b_rest = jnp.concatenate(b_rest, axis=0)                  # (L-1, 1, 4H)
    else:  # num_layers == 1: dummies, never read inside the kernel
        w_ih_rest = jnp.zeros((1, H, 4 * H), jnp.bfloat16)
        b_rest = jnp.zeros((1, 1, 4 * H), jnp.float32)
    w_hh_all = jnp.stack(w_hh_all)                                # (L, H, 4H)

    key, k1, k2 = jax.random.split(key, 3)
    kf = 1.0 / jnp.sqrt(jnp.float32(H))
    fc_w = jax.random.uniform(k1, (vocab_size, H), jnp.float32, -kf, kf)
    fc_b = jax.random.uniform(k2, (vocab_size,), jnp.float32, -kf, kf)
    # Pre-transpose, pre-cast AND pre-pad the vocab dim to a lane-dense multiple
    # of the fc column tile -> no in-jit pad copy of the big weight per forward.
    Vp = _round_up(vocab_size, FC_COL_TILE)
    fc_w_p = jnp.zeros((H, Vp), jnp.bfloat16).at[:, :vocab_size].set(
        fc_w.T.astype(jnp.bfloat16))
    fc_b_p = jnp.zeros((1, Vp), jnp.float32).at[0, :vocab_size].set(fc_b)
    return {
        "lstm": {"w_ih0": w_ih0, "b0": b0, "w_ih_rest": w_ih_rest,
                 "w_hh": w_hh_all, "b_rest": b_rest},
        "fc_w": fc_w_p,                                            # (H, Vp) bf16
        "fc_b": fc_b_p,                                            # (1, Vp) f32
    }


@functools.partial(
    jax.jit, static_argnames=("sequence_length", "vocab_size", "num_batch_blocks"))
def vae_decoder_forward(params, z, *, sequence_length, vocab_size,
                        num_batch_blocks=1):
    """z: (B, latent_dim) -> logits (B, sequence_length, vocab_size)."""
    B = z.shape[0]
    lstm = params["lstm"]
    H = lstm["w_hh"].shape[1]

    # Fused z-projection + stacked LSTM (all layers, state resident in VMEM).
    lstm_out = run_lstm_stack(z, lstm["w_ih0"], lstm["b0"], lstm["w_ih_rest"],
                              lstm["w_hh"], lstm["b_rest"], sequence_length,
                              num_batch_blocks=num_batch_blocks)   # (T, B, H) bf16

    # Transpose the SMALL bf16 activations (not the big logits) to batch-major.
    x_bt = jnp.transpose(lstm_out, (1, 0, 2)).reshape(B * sequence_length, H)

    # Final Linear over every timestep (vocab weight streamed from HBM once).
    logits = matmul_bias(x_bt, params["fc_w"], params["fc_b"])     # (B*T, Vp) f32
    return logits[:, :vocab_size].reshape(B, sequence_length, vocab_size)


if __name__ == "__main__":
    # small shapes consistent with the module (scaled down from 64/256/512/30522/10)
    batch = 2
    latent_dim = 16
    intermediate_dim = 32
    sequence_length = 8
    vocab_size = 64
    num_layers = 3

    key = jax.random.PRNGKey(0)
    pkey, zkey = jax.random.split(key)
    params = init_params(pkey, latent_dim, intermediate_dim, vocab_size, num_layers)
    z = jax.random.normal(zkey, (batch, latent_dim), jnp.float32)

    logits = vae_decoder_forward(params, z, sequence_length=sequence_length,
                                 vocab_size=vocab_size, num_batch_blocks=1)
    logits = jax.block_until_ready(logits)
    assert logits.shape == (batch, sequence_length, vocab_size)
    assert bool(jnp.all(jnp.isfinite(logits)))
    print("KERNEL_OK")
</pallas_src>

<mosaic_0001>
module attributes {stable_mosaic.version = 11 : i64} {
  func.func @matmul_bias_kernel(%arg0: i32, %arg1: i32, %arg2: memref<16x32xbf16, #tpu.memory_space<vmem>>, %arg3: memref<32x512xbf16, #tpu.memory_space<vmem>>, %arg4: memref<1x512xf32, #tpu.memory_space<vmem>>, %arg5: memref<16x512xf32, #tpu.memory_space<vmem>>) attributes {dimension_semantics = [#tpu.dimension_semantics<parallel>, #tpu.dimension_semantics<parallel>], iteration_bounds = array<i64: 1, 1>, scalar_prefetch = 0 : i64, scratch_operands = 0 : i64, tpu.core_type = #tpu.core_type<tc>, window_params = [{transform_indices = @transform_0, window_bounds = array<i64: 16, 32>}, {transform_indices = @transform_1, window_bounds = array<i64: 32, 512>}, {transform_indices = @transform_2, window_bounds = array<i64: 1, 512>}, {transform_indices = @transform_3, window_bounds = array<i64: 16, 512>}]} {
    %c0 = arith.constant 0 : index
    %c0_0 = arith.constant 0 : index
    %0 = vector.load %arg2[%c0, %c0_0] : memref<16x32xbf16, #tpu.memory_space<vmem>>, vector<16x32xbf16>
    %c0_1 = arith.constant 0 : index
    %c0_2 = arith.constant 0 : index
    %1 = vector.load %arg3[%c0_1, %c0_2] : memref<32x512xbf16, #tpu.memory_space<vmem>>, vector<32x512xbf16>
    %cst = arith.constant dense<0.000000e+00> : vector<16x512xf32>
    %2 = tpu.matmul %0, %1, %cst {dimension_numbers = #tpu.dot_dimension_numbers<[1], [0], [0], [1], [0, 0, 1, 1], [], []>} : vector<16x32xbf16>, vector<32x512xbf16>, vector<16x512xf32> -> vector<16x512xf32>
    %c0_3 = arith.constant 0 : index
    %c0_4 = arith.constant 0 : index
    %3 = vector.load %arg4[%c0_3, %c0_4] : memref<1x512xf32, #tpu.memory_space<vmem>>, vector<1x512xf32>
    %4 = vector.broadcast %3 : vector<1x512xf32> to vector<16x512xf32>
    %5 = arith.addf %2, %4 : vector<16x512xf32>
    %c0_5 = arith.constant 0 : index
    %c0_6 = arith.constant 0 : index
    %6 = vector.load %arg5[%c0_5, %c0_6] : memref<16x512xf32, #tpu.memory_space<vmem>>, vector<16x512xf32>
    tpu.vector_store %arg5[%c0_5, %c0_6], %5 {strides = array<i32>} : memref<16x512xf32, #tpu.memory_space<vmem>>, vector<16x512xf32>,
    return
  }
  func.func @transform_0(%arg0: i32, %arg1: i32) -> (i32, i32) {
    %c0_i32 = arith.constant 0 : i32
    %c0_i32_0 = arith.constant 0 : i32
    return %arg1, %c0_i32 : i32, i32
  }
  func.func @transform_1(%arg0: i32, %arg1: i32) -> (i32, i32) {
    %c0_i32 = arith.constant 0 : i32
    %c0_i32_0 = arith.constant 0 : i32
    return %c0_i32, %arg0 : i32, i32
  }
  func.func @transform_2(%arg0: i32, %arg1: i32) -> (i32, i32) {
    %c0_i32 = arith.constant 0 : i32
    %c0_i32_0 = arith.constant 0 : i32
    return %c0_i32, %arg0 : i32, i32
  }
  func.func @transform_3(%arg0: i32, %arg1: i32) -> (i32, i32) {
    %c0_i32 = arith.constant 0 : i32
    return %arg1, %arg0 : i32, i32
  }
}

module attributes {stable_mosaic.version = 11 : i64} {
  func.func @lstm_stack_kernel(%arg0: i32, %arg1: memref<2x16xf32, #tpu.memory_space<vmem>>, %arg2: memref<16x128xbf16, #tpu.memory_space<vmem>>, %arg3: memref<1x128xf32, #tpu.memory_space<vmem>>, %arg4: memref<2x32x128xbf16, #tpu.memory_space<vmem>>, %arg5: memref<3x32x128xbf16, #tpu.memory_space<vmem>>, %arg6: memref<2x1x128xf32, #tpu.memory_space<vmem>>, %arg7: memref<8x2x32xbf16, #tpu.memory_space<vmem>>, %arg8: memref<3x2x32xf32, #tpu.memory_space<vmem>>, %arg9: memref<3x2x32xf32, #tpu.memory_space<vmem>>) attributes {dimension_semantics = [#tpu.dimension_semantics<parallel>], iteration_bounds = array<i64: 1>, scalar_prefetch = 0 : i64, scratch_operands = 2 : i64, tpu.core_type = #tpu.core_type<tc>, window_params = [{transform_indices = @transform_0, window_bounds = array<i64: 2, 16>}, {pipeline_mode = #tpu.pipeline_mode<synchronous>, transform_indices = @transform_1, window_bounds = array<i64: 16, 128>}, {pipeline_mode = #tpu.pipeline_mode<synchronous>, transform_indices = @transform_2, window_bounds = array<i64: 1, 128>}, {pipeline_mode = #tpu.pipeline_mode<synchronous>, transform_indices = @transform_3, window_bounds = array<i64: 2, 32, 128>}, {pipeline_mode = #tpu.pipeline_mode<synchronous>, transform_indices = @transform_4, window_bounds = array<i64: 3, 32, 128>}, {pipeline_mode = #tpu.pipeline_mode<synchronous>, transform_indices = @transform_5, window_bounds = array<i64: 2, 1, 128>}, {transform_indices = @transform_6, window_bounds = array<i64: 8, 2, 32>}]} {
    %cst = arith.constant 0.000000e+00 : f32
    %0 = vector.broadcast %cst : f32 to vector<3x2x32xf32>
    %c0 = arith.constant 0 : index
    %c0_0 = arith.constant 0 : index
    %c0_1 = arith.constant 0 : index
    %1 = vector.load %arg8[%c0, %c0_0, %c0_1] : memref<3x2x32xf32, #tpu.memory_space<vmem>>, vector<3x2x32xf32>
    tpu.vector_store %arg8[%c0, %c0_0, %c0_1], %0 {strides = array<i32>} : memref<3x2x32xf32, #tpu.memory_space<vmem>>, vector<3x2x32xf32>,
    %cst_2 = arith.constant 0.000000e+00 : f32
    %2 = vector.broadcast %cst_2 : f32 to vector<3x2x32xf32>
    %c0_3 = arith.constant 0 : index
    %c0_4 = arith.constant 0 : index
    %c0_5 = arith.constant 0 : index
    %3 = vector.load %arg9[%c0_3, %c0_4, %c0_5] : memref<3x2x32xf32, #tpu.memory_space<vmem>>, vector<3x2x32xf32>
    tpu.vector_store %arg9[%c0_3, %c0_4, %c0_5], %2 {strides = array<i32>} : memref<3x2x32xf32, #tpu.memory_space<vmem>>, vector<3x2x32xf32>,
    %c0_6 = arith.constant 0 : index
    %c0_7 = arith.constant 0 : index
    %4 = vector.load %arg3[%c0_6, %c0_7] : memref<1x128xf32, #tpu.memory_space<vmem>>, vector<1x128xf32>
    %5 = vector.shape_cast %4 : vector<1x128xf32> to vector<1x128xf32>
    %6 = vector.broadcast %5 : vector<1x128xf32> to vector<2x128xf32>
    %c0_8 = arith.constant 0 : index
    %c0_9 = arith.constant 0 : index
    %7 = vector.load %arg1[%c0_8, %c0_9] : memref<2x16xf32, #tpu.memory_space<vmem>>, vector<2x16xf32>
    %8 = arith.truncf %7 : vector<2x16xf32> to vector<2x16xbf16>
    %c0_10 = arith.constant 0 : index
    %c0_11 = arith.constant 0 : index
    %9 = vector.load %arg2[%c0_10, %c0_11] : memref<16x128xbf16, #tpu.memory_space<vmem>>, vector<16x128xbf16>
    %cst_12 = arith.constant dense<0.000000e+00> : vector<2x128xf32>
    %10 = tpu.matmul %8, %9, %cst_12 {dimension_numbers = #tpu.dot_dimension_numbers<[1], [0], [0], [1], [0, 0, 1, 1], [], []>} : vector<2x16xbf16>, vector<16x128xbf16>, vector<2x128xf32> -> vector<2x128xf32>
    %11 = arith.addf %6, %10 : vector<2x128xf32>
    %c0_13 = arith.constant 0 : index
    %c0_14 = arith.constant 0 : index
    %c0_15 = arith.constant 0 : index
    %12 = vector.load %arg6[%c0_13, %c0_14, %c0_15] : memref<2x1x128xf32, #tpu.memory_space<vmem>>, vector<1x1x128xf32>
    %13 = vector.shape_cast %12 : vector<1x1x128xf32> to vector<1x128xf32>
    %14 = vector.shape_cast %13 : vector<1x128xf32> to vector<1x128xf32>
    %15 = vector.broadcast %14 : vector<1x128xf32> to vector<2x128xf32>
    %c1 = arith.constant 1 : index
    %c0_16 = arith.constant 0 : index
    %c0_17 = arith.constant 0 : index
    %16 = vector.load %arg6[%c1, %c0_16, %c0_17] : memref<2x1x128xf32, #tpu.memory_space<vmem>>, vector<1x1x128xf32>
    %17 = vector.shape_cast %16 : vector<1x1x128xf32> to vector<1x128xf32>
    %18 = vector.shape_cast %17 : vector<1x128xf32> to vector<1x128xf32>
    %19 = vector.broadcast %18 : vector<1x128xf32> to vector<2x128xf32>
    %c0_i32 = arith.constant 0 : i32
    %c8_i32 = arith.constant 8 : i32
    %20 = arith.addi %c0_i32, %c8_i32 : i32
    %c1_i32 = arith.constant 1 : i32
    scf.for %arg10 = %c0_i32 to %20 step %c1_i32  : i32 {
      %c0_19 = arith.constant 0 : index
      %c0_20 = arith.constant 0 : index
      %c0_21 = arith.constant 0 : index
      %21 = vector.load %arg8[%c0_19, %c0_20, %c0_21] : memref<3x2x32xf32, #tpu.memory_space<vmem>>, vector<1x2x32xf32>
      %22 = vector.shape_cast %21 : vector<1x2x32xf32> to vector<2x32xf32>
      %c0_22 = arith.constant 0 : index
      %c0_23 = arith.constant 0 : index
      %c0_24 = arith.constant 0 : index
      %23 = vector.load %arg9[%c0_22, %c0_23, %c0_24] : memref<3x2x32xf32, #tpu.memory_space<vmem>>, vector<1x2x32xf32>
      %24 = vector.shape_cast %23 : vector<1x2x32xf32> to vector<2x32xf32>
      %25 = arith.truncf %22 : vector<2x32xf32> to vector<2x32xbf16>
      %c0_25 = arith.constant 0 : index
      %c0_26 = arith.constant 0 : index
      %c0_27 = arith.constant 0 : index
      %26 = vector.load %arg5[%c0_25, %c0_26, %c0_27] : memref<3x32x128xbf16, #tpu.memory_space<vmem>>, vector<1x32x128xbf16>
      %27 = vector.shape_cast %26 : vector<1x32x128xbf16> to vector<32x128xbf16>
      %cst_28 = arith.constant dense<0.000000e+00> : vector<2x128xf32>
      %28 = tpu.matmul %25, %27, %cst_28 {dimension_numbers = #tpu.dot_dimension_numbers<[1], [0], [0], [1], [0, 0, 1, 1], [], []>} : vector<2x32xbf16>, vector<32x128xbf16>, vector<2x128xf32> -> vector<2x128xf32>
      %29 = arith.addf %11, %28 : vector<2x128xf32>
      %30 = vector.extract_strided_slice %29 {offsets = [0, 0], sizes = [2, 32], strides = [1, 1]} : vector<2x128xf32> to vector<2x32xf32>
      %31 = arith.negf %30 : vector<2x32xf32>
      %32 = math.exp %31 : vector<2x32xf32>
      %cst_29 = arith.constant 1.000000e+00 : f32
      %33 = vector.broadcast %cst_29 : f32 to vector<2x32xf32>
      %34 = arith.addf %33, %32 : vector<2x32xf32>
      %35 = arith.divf %33, %34 : vector<2x32xf32>
      %36 = vector.extract_strided_slice %29 {offsets = [0, 32], sizes = [2, 32], strides = [1, 1]} : vector<2x128xf32> to vector<2x32xf32>
      %37 = arith.negf %36 : vector<2x32xf32>
      %38 = math.exp %37 : vector<2x32xf32>
      %cst_30 = arith.constant 1.000000e+00 : f32
      %39 = vector.broadcast %cst_30 : f32 to vector<2x32xf32>
      %40 = arith.addf %39, %38 : vector<2x32xf32>
      %41 = arith.divf %39, %40 : vector<2x32xf32>
      %42 = vector.extract_strided_slice %29 {offsets = [0, 64], sizes = [2, 32], strides = [1, 1]} : vector<2x128xf32> to vector<2x32xf32>
      %43 = math.tanh %42 : vector<2x32xf32>
      %44 = vector.extract_strided_slice %29 {offsets = [0, 96], sizes = [2, 32], strides = [1, 1]} : vector<2x128xf32> to vector<2x32xf32>
      %45 = arith.negf %44 : vector<2x32xf32>
      %46 = math.exp %45 : vector<2x32xf32>
      %cst_31 = arith.constant 1.000000e+00 : f32
      %47 = vector.broadcast %cst_31 : f32 to vector<2x32xf32>
      %48 = arith.addf %47, %46 : vector<2x32xf32>
      %49 = arith.divf %47, %48 : vector<2x32xf32>
      %50 = arith.mulf %41, %24 : vector<2x32xf32>
      %51 = arith.mulf %35, %43 : vector<2x32xf32>
      %52 = arith.addf %50, %51 : vector<2x32xf32>
      %53 = math.tanh %52 : vector<2x32xf32>
      %54 = arith.mulf %49, %53 : vector<2x32xf32>
      %c0_32 = arith.constant 0 : index
      %c0_33 = arith.constant 0 : index
      %c0_34 = arith.constant 0 : index
      %55 = vector.load %arg9[%c0_32, %c0_33, %c0_34] : memref<3x2x32xf32, #tpu.memory_space<vmem>>, vector<1x2x32xf32>
      %56 = vector.shape_cast %55 : vector<1x2x32xf32> to vector<2x32xf32>
      %57 = vector.shape_cast %52 : vector<2x32xf32> to vector<1x2x32xf32>
      tpu.vector_store %arg9[%c0_32, %c0_33, %c0_34], %57 {strides = array<i32>} : memref<3x2x32xf32, #tpu.memory_space<vmem>>, vector<1x2x32xf32>,
      %c0_35 = arith.constant 0 : index
      %c0_36 = arith.constant 0 : index
      %c0_37 = arith.constant 0 : index
      %58 = vector.load %arg8[%c0_35, %c0_36, %c0_37] : memref<3x2x32xf32, #tpu.memory_space<vmem>>, vector<1x2x32xf32>
      %59 = vector.shape_cast %58 : vector<1x2x32xf32> to vector<2x32xf32>
      %60 = vector.shape_cast %54 : vector<2x32xf32> to vector<1x2x32xf32>
      tpu.vector_store %arg8[%c0_35, %c0_36, %c0_37], %60 {strides = array<i32>} : memref<3x2x32xf32, #tpu.memory_space<vmem>>, vector<1x2x32xf32>,
      %61 = arith.truncf %54 : vector<2x32xf32> to vector<2x32xbf16>
      %c0_38 = arith.constant 0 : index
      %c0_39 = arith.constant 0 : index
      %c0_40 = arith.constant 0 : index
      %62 = vector.load %arg4[%c0_38, %c0_39, %c0_40] : memref<2x32x128xbf16, #tpu.memory_space<vmem>>, vector<1x32x128xbf16>
      %63 = vector.shape_cast %62 : vector<1x32x128xbf16> to vector<32x128xbf16>
      %cst_41 = arith.constant dense<0.000000e+00> : vector<2x128xf32>
      %64 = tpu.matmul %61, %63, %cst_41 {dimension_numbers = #tpu.dot_dimension_numbers<[1], [0], [0], [1], [0, 0, 1, 1], [], []>} : vector<2x32xbf16>, vector<32x128xbf16>, vector<2x128xf32> -> vector<2x128xf32>
      %65 = arith.addf %15, %64 : vector<2x128xf32>
      %c1_42 = arith.constant 1 : index
      %c0_43 = arith.constant 0 : index
      %c0_44 = arith.constant 0 : index
      %66 = vector.load %arg8[%c1_42, %c0_43, %c0_44] : memref<3x2x32xf32, #tpu.memory_space<vmem>>, vector<1x2x32xf32>
      %67 = vector.shape_cast %66 : vector<1x2x32xf32> to vector<2x32xf32>
      %c1_45 = arith.constant 1 : index
      %c0_46 = arith.constant 0 : index
      %c0_47 = arith.constant 0 : index
      %68 = vector.load %arg9[%c1_45, %c0_46, %c0_47] : memref<3x2x32xf32, #tpu.memory_space<vmem>>, vector<1x2x32xf32>
      %69 = vector.shape_cast %68 : vector<1x2x32xf32> to vector<2x32xf32>
      %70 = arith.truncf %67 : vector<2x32xf32> to vector<2x32xbf16>
      %c1_48 = arith.constant 1 : index
      %c0_49 = arith.constant 0 : index
      %c0_50 = arith.constant 0 : index
      %71 = vector.load %arg5[%c1_48, %c0_49, %c0_50] : memref<3x32x128xbf16, #tpu.memory_space<vmem>>, vector<1x32x128xbf16>
      %72 = vector.shape_cast %71 : vector<1x32x128xbf16> to vector<32x128xbf16>
      %cst_51 = arith.constant dense<0.000000e+00> : vector<2x128xf32>
      %73 = tpu.matmul %70, %72, %cst_51 {dimension_numbers = #tpu.dot_dimension_numbers<[1], [0], [0], [1], [0, 0, 1, 1], [], []>} : vector<2x32xbf16>, vector<32x128xbf16>, vector<2x128xf32> -> vector<2x128xf32>
      %74 = arith.addf %65, %73 : vector<2x128xf32>
      %75 = vector.extract_strided_slice %74 {offsets = [0, 0], sizes = [2, 32], strides = [1, 1]} : vector<2x128xf32> to vector<2x32xf32>
      %76 = arith.negf %75 : vector<2x32xf32>
      %77 = math.exp %76 : vector<2x32xf32>
      %cst_52 = arith.constant 1.000000e+00 : f32
      %78 = vector.broadcast %cst_52 : f32 to vector<2x32xf32>
      %79 = arith.addf %78, %77 : vector<2x32xf32>
      %80 = arith.divf %78, %79 : vector<2x32xf32>
      %81 = vector.extract_strided_slice %74 {offsets = [0, 32], sizes = [2, 32], strides = [1, 1]} : vector<2x128xf32> to vector<2x32xf32>
      %82 = arith.negf %81 : vector<2x32xf32>
      %83 = math.exp %82 : vector<2x32xf32>
      %cst_53 = arith.constant 1.000000e+00 : f32
      %84 = vector.broadcast %cst_53 : f32 to vector<2x32xf32>
      %85 = arith.addf %84, %83 : vector<2x32xf32>
      %86 = arith.divf %84, %85 : vector<2x32xf32>
      %87 = vector.extract_strided_slice %74 {offsets = [0, 64], sizes = [2, 32], strides = [1, 1]} : vector<2x128xf32> to vector<2x32xf32>
      %88 = math.tanh %87 : vector<2x32xf32>
      %89 = vector.extract_strided_slice %74 {offsets = [0, 96], sizes = [2, 32], strides = [1, 1]} : vector<2x128xf32> to vector<2x32xf32>
      %90 = arith.negf %89 : vector<2x32xf32>
      %91 = math.exp %90 : vector<2x32xf32>
      %cst_54 = arith.constant 1.000000e+00 : f32
      %92 = vector.broadcast %cst_54 : f32 to vector<2x32xf32>
      %93 = arith.addf %92, %91 : vector<2x32xf32>
      %94 = arith.divf %92, %93 : vector<2x32xf32>
      %95 = arith.mulf %86, %69 : vector<2x32xf32>
      %96 = arith.mulf %80, %88 : vector<2x32xf32>
      %97 = arith.addf %95, %96 : vector<2x32xf32>
      %98 = math.tanh %97 : vector<2x32xf32>
      %99 = arith.mulf %94, %98 : vector<2x32xf32>
      %c1_55 = arith.constant 1 : index
      %c0_56 = arith.constant 0 : index
      %c0_57 = arith.constant 0 : index
      %100 = vector.load %arg9[%c1_55, %c0_56, %c0_57] : memref<3x2x32xf32, #tpu.memory_space<vmem>>, vector<1x2x32xf32>
      %101 = vector.shape_cast %100 : vector<1x2x32xf32> to vector<2x32xf32>
      %102 = vector.shape_cast %97 : vector<2x32xf32> to vector<1x2x32xf32>
      tpu.vector_store %arg9[%c1_55, %c0_56, %c0_57], %102 {strides = array<i32>} : memref<3x2x32xf32, #tpu.memory_space<vmem>>, vector<1x2x32xf32>,
      %c1_58 = arith.constant 1 : index
      %c0_59 = arith.constant 0 : index
      %c0_60 = arith.constant 0 : index
      %103 = vector.load %arg8[%c1_58, %c0_59, %c0_60] : memref<3x2x32xf32, #tpu.memory_space<vmem>>, vector<1x2x32xf32>
      %104 = vector.shape_cast %103 : vector<1x2x32xf32> to vector<2x32xf32>
      %105 = vector.shape_cast %99 : vector<2x32xf32> to vector<1x2x32xf32>
      tpu.vector_store %arg8[%c1_58, %c0_59, %c0_60], %105 {strides = array<i32>} : memref<3x2x32xf32, #tpu.memory_space<vmem>>, vector<1x2x32xf32>,
      %106 = arith.truncf %99 : vector<2x32xf32> to vector<2x32xbf16>
      %c1_61 = arith.constant 1 : index
      %c0_62 = arith.constant 0 : index
      %c0_63 = arith.constant 0 : index
      %107 = vector.load %arg4[%c1_61, %c0_62, %c0_63] : memref<2x32x128xbf16, #tpu.memory_space<vmem>>, vector<1x32x128xbf16>
      %108 = vector.shape_cast %107 : vector<1x32x128xbf16> to vector<32x128xbf16>
      %cst_64 = arith.constant dense<0.000000e+00> : vector<2x128xf32>
      %109 = tpu.matmul %106, %108, %cst_64 {dimension_numbers = #tpu.dot_dimension_numbers<[1], [0], [0], [1], [0, 0, 1, 1], [], []>} : vector<2x32xbf16>, vector<32x128xbf16>, vector<2x128xf32> -> vector<2x128xf32>
      %110 = arith.addf %19, %109 : vector<2x128xf32>
      %c2 = arith.constant 2 : index
      %c0_65 = arith.constant 0 : index
      %c0_66 = arith.constant 0 : index
      %111 = vector.load %arg8[%c2, %c0_65, %c0_66] : memref<3x2x32xf32, #tpu.memory_space<vmem>>, vector<1x2x32xf32>
      %112 = vector.shape_cast %111 : vector<1x2x32xf32> to vector<2x32xf32>
      %c2_67 = arith.constant 2 : index
      %c0_68 = arith.constant 0 : index
      %c0_69 = arith.constant 0 : index
      %113 = vector.load %arg9[%c2_67, %c0_68, %c0_69] : memref<3x2x32xf32, #tpu.memory_space<vmem>>, vector<1x2x32xf32>
      %114 = vector.shape_cast %113 : vector<1x2x32xf32> to vector<2x32xf32>
      %115 = arith.truncf %112 : vector<2x32xf32> to vector<2x32xbf16>
      %c2_70 = arith.constant 2 : index
      %c0_71 = arith.constant 0 : index
      %c0_72 = arith.constant 0 : index
      %116 = vector.load %arg5[%c2_70, %c0_71, %c0_72] : memref<3x32x128xbf16, #tpu.memory_space<vmem>>, vector<1x32x128xbf16>
      %117 = vector.shape_cast %116 : vector<1x32x128xbf16> to vector<32x128xbf16>
      %cst_73 = arith.constant dense<0.000000e+00> : vector<2x128xf32>
      %118 = tpu.matmul %115, %117, %cst_73 {dimension_numbers = #tpu.dot_dimension_numbers<[1], [0], [0], [1], [0, 0, 1, 1], [], []>} : vector<2x32xbf16>, vector<32x128xbf16>, vector<2x128xf32> -> vector<2x128xf32>
      %119 = arith.addf %110, %118 : vector<2x128xf32>
      %120 = vector.extract_strided_slice %119 {offsets = [0, 0], sizes = [2, 32], strides = [1, 1]} : vector<2x128xf32> to vector<2x32xf32>
      %121 = arith.negf %120 : vector<2x32xf32>
      %122 = math.exp %121 : vector<2x32xf32>
      %cst_74 = arith.constant 1.000000e+00 : f32
      %123 = vector.broadcast %cst_74 : f32 to vector<2x32xf32>
      %124 = arith.addf %123, %122 : vector<2x32xf32>
      %125 = arith.divf %123, %124 : vector<2x32xf32>
      %126 = vector.extract_strided_slice %119 {offsets = [0, 32], sizes = [2, 32], strides = [1, 1]} : vector<2x128xf32> to vector<2x32xf32>
      %127 = arith.negf %126 : vector<2x32xf32>
      %128 = math.exp %127 : vector<2x32xf32>
      %cst_75 = arith.constant 1.000000e+00 : f32
      %129 = vector.broadcast %cst_75 : f32 to vector<2x32xf32>
      %130 = arith.addf %129, %128 : vector<2x32xf32>
      %131 = arith.divf %129, %130 : vector<2x32xf32>
      %132 = vector.extract_strided_slice %119 {offsets = [0, 64], sizes = [2, 32], strides = [1, 1]} : vector<2x128xf32> to vector<2x32xf32>
      %133 = math.tanh %132 : vector<2x32xf32>
      %134 = vector.extract_strided_slice %119 {offsets = [0, 96], sizes = [2, 32], strides = [1, 1]} : vector<2x128xf32> to vector<2x32xf32>
      %135 = arith.negf %134 : vector<2x32xf32>
      %136 = math.exp %135 : vector<2x32xf32>
      %cst_76 = arith.constant 1.000000e+00 : f32
      %137 = vector.broadcast %cst_76 : f32 to vector<2x32xf32>
      %138 = arith.addf %137, %136 : vector<2x32xf32>
      %139 = arith.divf %137, %138 : vector<2x32xf32>
      %140 = arith.mulf %131, %114 : vector<2x32xf32>
      %141 = arith.mulf %125, %133 : vector<2x32xf32>
      %142 = arith.addf %140, %141 : vector<2x32xf32>
      %143 = math.tanh %142 : vector<2x32xf32>
      %144 = arith.mulf %139, %143 : vector<2x32xf32>
      %c2_77 = arith.constant 2 : index
      %c0_78 = arith.constant 0 : index
      %c0_79 = arith.constant 0 : index
      %145 = vector.load %arg9[%c2_77, %c0_78, %c0_79] : memref<3x2x32xf32, #tpu.memory_space<vmem>>, vector<1x2x32xf32>
      %146 = vector.shape_cast %145 : vector<1x2x32xf32> to vector<2x32xf32>
      %147 = vector.shape_cast %142 : vector<2x32xf32> to vector<1x2x32xf32>
      tpu.vector_store %arg9[%c2_77, %c0_78, %c0_79], %147 {strides = array<i32>} : memref<3x2x32xf32, #tpu.memory_space<vmem>>, vector<1x2x32xf32>,
      %c2_80 = arith.constant 2 : index
      %c0_81 = arith.constant 0 : index
      %c0_82 = arith.constant 0 : index
      %148 = vector.load %arg8[%c2_80, %c0_81, %c0_82] : memref<3x2x32xf32, #tpu.memory_space<vmem>>, vector<1x2x32xf32>
      %149 = vector.shape_cast %148 : vector<1x2x32xf32> to vector<2x32xf32>
      %150 = vector.shape_cast %144 : vector<2x32xf32> to vector<1x2x32xf32>
      tpu.vector_store %arg8[%c2_80, %c0_81, %c0_82], %150 {strides = array<i32>} : memref<3x2x32xf32, #tpu.memory_space<vmem>>, vector<1x2x32xf32>,
      %151 = arith.truncf %144 : vector<2x32xf32> to vector<2x32xbf16>
      %152 = arith.index_cast %arg10 : i32 to index
      %c0_83 = arith.constant 0 : index
      %c0_84 = arith.constant 0 : index
      %153 = vector.load %arg7[%152, %c0_83, %c0_84] : memref<8x2x32xbf16, #tpu.memory_space<vmem>>, vector<1x2x32xbf16>
      %154 = vector.shape_cast %153 : vector<1x2x32xbf16> to vector<2x32xbf16>
      %155 = vector.shape_cast %151 : vector<2x32xbf16> to vector<1x2x32xbf16>
      tpu.vector_store %arg7[%152, %c0_83, %c0_84], %155 {strides = array<i32>} : memref<8x2x32xbf16, #tpu.memory_space<vmem>>, vector<1x2x32xbf16>,
    }
    %c8_i32_18 = arith.constant 8 : i32
    return
  }
  func.func @transform_0(%arg0: i32) -> (i32, i32) {
    %c0_i32 = arith.constant 0 : i32
    %c0_i32_0 = arith.constant 0 : i32
    return %arg0, %c0_i32 : i32, i32
  }
  func.func @transform_1(%arg0: i32) -> (i32, i32) {
    %c0_i32 = arith.constant 0 : i32
    %c0_i32_0 = arith.constant 0 : i32
    %c0_i32_1 = arith.constant 0 : i32
    return %c0_i32, %c0_i32_0 : i32, i32
  }
  func.func @transform_2(%arg0: i32) -> (i32, i32) {
    %c0_i32 = arith.constant 0 : i32
    %c0_i32_0 = arith.constant 0 : i32
    %c0_i32_1 = arith.constant 0 : i32
    return %c0_i32, %c0_i32_0 : i32, i32
  }
  func.func @transform_3(%arg0: i32) -> (i32, i32, i32) {
    %c0_i32 = arith.constant 0 : i32
    %c0_i32_0 = arith.constant 0 : i32
    %c0_i32_1 = arith.constant 0 : i32
    %c0_i32_2 = arith.constant 0 : i32
    return %c0_i32, %c0_i32_0, %c0_i32_1 : i32, i32, i32
  }
  func.func @transform_4(%arg0: i32) -> (i32, i32, i32) {
    %c0_i32 = arith.constant 0 : i32
    %c0_i32_0 = arith.constant 0 : i32
    %c0_i32_1 = arith.constant 0 : i32
    %c0_i32_2 = arith.constant 0 : i32
    return %c0_i32, %c0_i32_0, %c0_i32_1 : i32, i32, i32
  }
  func.func @transform_5(%arg0: i32) -> (i32, i32, i32) {
    %c0_i32 = arith.constant 0 : i32
    %c0_i32_0 = arith.constant 0 : i32
    %c0_i32_1 = arith.constant 0 : i32
    %c0_i32_2 = arith.constant 0 : i32
    return %c0_i32, %c0_i32_0, %c0_i32_1 : i32, i32, i32
  }
  func.func @transform_6(%arg0: i32) -> (i32, i32, i32) {
    %c0_i32 = arith.constant 0 : i32
    %c0_i32_0 = arith.constant 0 : i32
    %c0_i32_1 = arith.constant 0 : i32
    return %c0_i32, %arg0, %c0_i32_0 : i32, i32, i32
  }
}

</mosaic_0001>

<bundles_post_ra>
// kernel: vae_decoder_forward.3
= control target key start
LH: loop header
LB: loop body
LE: loop exit
PB: predicated region body
PF: predicated region fallthrough
CT: control target
= control target key end

     0   :  { %v219_v1 = vmov 0   ;;  %vm92_vm0 = vcmask 261120   ;;  %v27_v10 = vlaneseq  ;;  %s294_s1 = inlined_call_operand.vmem [shape: bf16[32,512], index: 1, kind: input, shape index: {}]   ;;  %s295_s0 = inlined_call_operand.vmem [shape: bf16[16,32], index: 0, kind: input, shape index: {}]   ;;  %s296_s2 = inlined_call_operand.vmem [shape: f32[1,512], index: 2, kind: input, shape index: {}]   ;;  %s297_s3 = inlined_call_operand.vmem [shape: f32[16,512], index: 3, kind: output, shape index: {}]  }
   0x1   :  { %v206_v0 = vld [vmem:[%s294_s1 + $0x4] ss:$16 sps:$4 sm:$0xff]   ;;  %128 = vmatprep.mubr.bf16.mxu0 %v219_v1  ;;  %171 = vmatprep.mubr.bf16.mxu1 %v219_v1  ;;  %v208_v2 = vld [vmem:[%s294_s1 + $0xc] ss:$16 sps:$4 sm:$0xff]   ;;  %v210_v3 = vld [vmem:[%s294_s1] ss:$16 sps:$4 sm:$0xff]  }
   0x2   :  { %96 = vmatprep.subr.bf16.mxu0 %v206_v0  ;;  %v211_v4 = vld [vmem:[%s294_s1 + $0x8] ss:$16 sps:$4 sm:$0xff]   ;;  %139 = vmatprep.subr.bf16.mxu1 %v208_v2  ;;  %v212_v5 = vld [vmem:[%s294_s1 + $0x24] ss:$16 sps:$4 sm:$0xff]   ;;  %v214_v6 = vld [vmem:[%s294_s1 + $0x2c] ss:$16 sps:$4 sm:$0xff]  }
   0x3   :  { %97 = vmatpush1.bf16.msra.mxu0 %v210_v3  ;;  %140 = vmatpush1.bf16.msra.mxu1 %v211_v4  ;;  %v216_v7 = vld [vmem:[%s294_s1 + $0x20] ss:$16 sps:$4 sm:$0xff]   ;;  %v217_v8 = vld [vmem:[%s294_s1 + $0x28] ss:$16 sps:$4 sm:$0xff]   ;;  %v28_v11 = vshrl.u32 %v27_v10, 7 }
   0x4   :  { %98 = vmatprep.subr.bf16.mxu0 %v212_v5  ;;  %141 = vmatprep.subr.bf16.mxu1 %v214_v6  ;;  %v218_v9 = vld [vmem:[%s295_s0] sm:$0xff]  }
   0x5   :  { %v29_v12 = vsub.s32 0, %v28_v11  ;;  %v37_v13 = vsub.s32 2, %v28_v11  ;;  %v25_v14 = vld [vmem:[%s296_s2] sm:$0xf]  ;;  %v33_v15 = vsub.s32 1, %v28_v11  ;;  %v41_v16 = vsub.s32 3, %v28_v11 }
   0x7   :  { %99 = vmatpush1.bf16.msra.mxu0 %v216_v7  ;;  %142 = vmatpush1.bf16.msra.mxu1 %v217_v8  ;;  %v30_v17 = vrot.slane %v25_v14, %v29_v12  ;;  %v38_v18 = vrot.slane %v25_v14, %v37_v13  ;;  %v34_v19 = vrot.slane %v25_v14, %v33_v15 }
   0x8   :  { %v42_v20 = vrot.slane %v25_v14, %v41_v16 }
   0xa   :  { %203 = vmatmul.mubr.msk.bf16.vlgmr.msra.gmra.mrb[0].mxu0 %vm92_vm0, %v218_v9  ;;  %204 = vmatmul.mubr.msk.bf16.vlgmr.msra.gmra.mrb[0].mxu1 %vm92_vm0, %v218_v9 }
  0xdd   :  { %v130_v21 = vpop.f32.mrb[0].mxu0  ;;  %v173_v22 = vpop.f32.mrb[0].mxu1 }
  0xde   :  { %v131_v23 = vadd.f32 %v130_v21, %v30_v17  ;;  %v174_v24 = vadd.f32 %v173_v22, %v38_v18  ;;  %v132_v25 = vpop.f32.mrb[1].mxu0  ;;  %v175_v26 = vpop.f32.mrb[1].mxu1 }
  0xdf   :  { %v133_v27 = vadd.f32 %v132_v25, %v34_v19  ;;  %v176_v28 = vadd.f32 %v175_v26, %v42_v20  ;;  %v134_v29 = vpop.f32.mrb[2].mxu0  ;;  %v177_v30 = vpop.f32.mrb[2].mxu1 }
  0xe0   :  { %182 = vst [vmem:[%s297_s3] sm:$0xff] %v131_v23  ;;  %184 = vst [vmem:[%s297_s3 + $0x10] sm:$0xff] %v174_v24  ;;  %v135_v31 = vadd.f32 %v134_v29, %v30_v17  ;;  %v178_v32 = vadd.f32 %v177_v30, %v38_v18  ;;  %v136_v33 = vpop.f32.mrb[3].mxu0  ;;  %v179_v34 = vpop.f32.mrb[3].mxu1 }
  0xe1   :  { %183 = vst [vmem:[%s297_s3 + $0x8] sm:$0xff] %v133_v27  ;;  %185 = vst [vmem:[%s297_s3 + $0x18] sm:$0xff] %v176_v28  ;;  %v137_v35 = vadd.f32 %v136_v33, %v34_v19  ;;  %v180_v36 = vadd.f32 %v179_v34, %v42_v20 }
  0xe2   :  { %186 = vst [vmem:[%s297_s3 + $0x20] sm:$0xff] %v135_v31  ;;  %188 = vst [vmem:[%s297_s3 + $0x30] sm:$0xff] %v178_v32 }
  0xe3   :  { %187 = vst [vmem:[%s297_s3 + $0x28] sm:$0xff] %v137_v35  ;;  %189 = vst [vmem:[%s297_s3 + $0x38] sm:$0xff] %v180_v36 }

// kernel: vae_decoder_forward.2
= control target key start
LH: loop header
LB: loop body
LE: loop exit
PB: predicated region body
PF: predicated region fallthrough
CT: control target
= control target key end

     0   :  { %11 = vsyncpa [#allocation5], 0  ;;  %s994_s0 = inlined_call_operand.vmem [shape: f32[2,16], index: 0, kind: input, shape index: {}]   ;;  %s995_s1 = inlined_call_operand.vmem [shape: bf16[16,128], index: 1, kind: input, shape index: {}]   ;;  %s996_s2 = inlined_call_operand.vmem [shape: f32[1,128], index: 2, kind: input, shape index: {}]   ;;  %s997_s3 = inlined_call_operand.hbm [shape: bf16[2,32,128], index: 3, kind: input, shape index: {}]   ;;  %s998_s4 = inlined_call_operand.hbm [shape: bf16[3,32,128], index: 4, kind: input, shape index: {}]   ;;  %s999_s5 = inlined_call_operand.vmem [shape: f32[2,1,128], index: 5, kind: input, shape index: {}]   ;;  %s1000_s6 = inlined_call_operand.vmem [shape: bf16[8,2,32], index: 6, kind: output, shape index: {}]  }
   0x1   :  { %12 = vsyncpa [#allocation7], 0  ;;  %s823_s21 = smov [#allocation4]   ;;  %s767_s25 = scalar_lea.hbm %s997_s3, 512 }
   0x2   :  { %s24_s22 = sshll.u32 %s823_s21, 4  ;;  %p768_p0 = scmp.ne.s32.totalorder %s997_s3, %s767_s25  ;;  %s25_s22 = int_to_ptr.vmem [resolvable:$true] %s24_s22 }
   0x3   :  { %p771_p1 = scmp.lt.u32.totalorder %s767_s25, %s997_s3 }
   0x5   :  { %p773_p2 = pnand %p771_p1, %p768_p0 }
   0x7   :  { %776 = shalt.err (!%p773_p2)
}
   0x8   :  { %s777_s30 = scalar_lea.vmem %s25_s22, 512  ;;  %p782_p4 = scmp.lt.s32.totalorder %s25_s22, %s25_s22 }
   0x9   :  { %p778_p3 = scmp.ne.s32.totalorder %s25_s22, %s777_s30  ;;  %p783_p5 = scmp.lt.s32.totalorder %s777_s30, %s777_s30 }
   0xb   :  { %p784_p6 = por %p783_p5, %p782_p4 }
   0xd   :  { %p785_p7 = pnand %p784_p6, %p778_p3 }
   0xf   :  { %788 = shalt.err (!%p785_p7)
}
  0x10   :  { %s824_s7 = smov 64   ;;  %s825_s8 = smov 4  }
  0x11   :  { %30 = dma.hbm_to_vmem [thread:$0]  %s997_s3, 512, %s25_s22, [#allocation5], %s824_s7, %s824_s7, %s825_s8  }
  0x12   :  { %s826_s11 = smov [#allocation6]   ;;  %s789_s15 = scalar_lea.hbm %s998_s4, 768 }
  0x13   :  { %s36_s12 = sshll.u32 %s826_s11, 4  ;;  %p790_p8 = scmp.ne.s32.totalorder %s998_s4, %s789_s15  ;;  %s37_s12 = int_to_ptr.vmem [resolvable:$true] %s36_s12 }
  0x14   :  { %p793_p9 = scmp.lt.u32.totalorder %s789_s15, %s998_s4 }
  0x16   :  { %p795_p10 = pnand %p793_p9, %p790_p8 }
  0x18   :  { %798 = shalt.err (!%p795_p10)
}
  0x19   :  { %s799_s20 = scalar_lea.vmem %s37_s12, 768  ;;  %p804_p12 = scmp.lt.s32.totalorder %s37_s12, %s37_s12 }
  0x1a   :  { %p800_p11 = scmp.ne.s32.totalorder %s37_s12, %s799_s20  ;;  %p805_p13 = scmp.lt.s32.totalorder %s799_s20, %s799_s20 }
  0x1c   :  { %p806_p0 = por %p805_p13, %p804_p12 }
  0x1e   :  { %p807_p1 = pnand %p806_p0, %p800_p11 }
  0x20   :  { %810 = shalt.err (!%p807_p1)
}
  0x21   :  { %42 = dma.hbm_to_vmem [thread:$0]  %s998_s4, 768, %s37_s12, [#allocation7], %s824_s7, %s824_s7, %s825_s8  }
  0x22   :  { %815 = dma.done.wait [#allocation5], 512  }
  0x23   :  { %816 = vsyncadd [#allocation5], 4294966784 }
  0x24   :  { %817 = dma.done.wait [#allocation7], 768  }
  0x25   :  { %818 = vsyncadd [#allocation7], 4294966528  ;;  %vm52_vm0 = vcmask 254976   ;;  %v827_v0 = vmov 0.0   ;;  %vm828_vm1 = vmmov 0   ;;  %v732_v3 = vld [vmem:[%s995_s1] sm:$0xff]  }
  0x26   :  { %53 = vst.msk [vmem:[#allocation2] sm:$0x3] %vm52_vm0, %v827_v0  ;;  %54 = vst.msk [vmem:[#allocation2 + $0x2] sm:$0x3] %vm52_vm0, %v827_v0  ;;  %656 = vmatprep.subr.bf16.mxu0 %v827_v0  ;;  %658 = vmatprep.mubr.msk.bf16.mxu0 %vm828_vm1, %v827_v0  ;;  %v903_v1 = vld [vmem:[%s999_s5] ss:$0 sm:$0xff] }
  0x27   :  { %55 = vst.msk [vmem:[#allocation2 + $0x4] sm:$0x3] %vm52_vm0, %v827_v0  ;;  %56 = vst.msk [vmem:[#allocation3] sm:$0x3] %vm52_vm0, %v827_v0  ;;  %v908_v2 = vld [vmem:[%s999_s5 + $0x1] ss:$0 sm:$0xff]  ;;  %657 = vmatpush3.bf16.msra.mxu0 %v732_v3 }
  0x28   :  { %57 = vst.msk [vmem:[#allocation3 + $0x2] sm:$0x3] %vm52_vm0, %v827_v0  ;;  %58 = vst.msk [vmem:[#allocation3 + $0x4] sm:$0x3] %vm52_vm0, %v827_v0  ;;  %v66_v4 = vld [vmem:[%s994_s0] sm:$0x3] }
  0x29   :  { %v67_v5 = vpack.c.bf16 %v66_v4, %v66_v4  ;;  %vm76_vm2 = vcmask 130048   ;;  %v615_v6 = vld [vmem:[%s996_s2] ss:$0 sm:$0xff]  ;;  %s921_s5 = smov 0  }
  0x2b   :  { %659 = vmatmul.mubr.msk.bf16.vlgmr.msra.gmra.mrb[0].mxu0 %vm76_vm2, %v67_v5 }
  0xfe   :  { %v114_v7 = vpop.f32.mrb[0].mxu0 }
  0xff   :  { %v919_v8 = vadd.f32 %v615_v6, %v114_v7  ;;  %v660_v9 = vpop.f32.mrb[1].mxu0 }
 0x100   :  { %v117_v10 = vpop.f32.mrb[2].mxu0 }
 0x101   :  { %v661_v11 = vpop.f32.mrb[3].mxu0 }
 0x102 LB: > { %v733_v12 = vld [vmem:[#allocation6] sm:$0xff]   ;;  %v829_v13 = vmov 0.0   ;;  %v734_v14 = vld [vmem:[#allocation6 + $0x8] sm:$0xff]   ;;  %vm830_vm3 = vmmov 0   ;;  %v142_v15 = vld [vmem:[#allocation2] sm:$0x3]  ;;  %s600_s9 = scalar_lea.vmem %s1000_s6, %s821_s5  ;;  %s821_s5 = sphi %s921_s5, %s141_s5  }
 0x103   : > { %662 = vmatprep.subr.bf16.mxu0 %v829_v13  ;;  %670 = vmatprep.subr.bf16.mxu1 %v829_v13  ;;  %vm161_vm4 = vcmask 261120   ;;  %v144_v16 = vpack.c.bf16 %v142_v15, %v142_v15  ;;  %s831_s0 = smov 64   ;;  %v143_v23 = vld [vmem:[#allocation3] sm:$0x3]  ;;  %s832_s1 = smov 32   ;;  %v735_v34 = vld [vmem:[#allocation4] sm:$0xff]  }
 0x104   : > { %663 = vmatpush3.bf16.msra.mxu0 %v733_v12  ;;  %666 = vmatprep.mubr.msk.bf16.mxu0 %vm830_vm3, %v829_v13  ;;  %v736_v35 = vld [vmem:[#allocation4 + $0x8] sm:$0xff]   ;;  %v311_v40 = vld [vmem:[#allocation3 + $0x2] sm:$0x3]  ;;  %v737_v41 = vld [vmem:[#allocation6 + $0x10] sm:$0xff]   ;;  %s833_s2 = smov 96   ;;  %vm601_vm5 = vcmask 253952  }
 0x105   : > { %664 = vmatprep.subr.bf16.mxu0 %v829_v13  ;;  %674 = vmatprep.mubr.msk.bf16.mxu1 %vm830_vm3, %v829_v13  ;;  %v738_v43 = vld [vmem:[#allocation6 + $0x18] sm:$0xff]   ;;  %v309_v44 = vld [vmem:[#allocation2 + $0x2] sm:$0x3]  ;;  %v741_v7 = vld [vmem:[#allocation6 + $0x20] sm:$0xff]   ;;  %s141_s5 = sadd.s32 1, %s821_s5  }
 0x106   : > { %671 = vmatpush3.bf16.msra.mxu1 %v735_v34  ;;  %v312_v45 = vpack.c.bf16 %v309_v44, %v309_v44  ;;  %v739_v62 = vld [vmem:[#allocation4 + $0x10] sm:$0xff]   ;;  %v740_v63 = vld [vmem:[#allocation4 + $0x18] sm:$0xff]   ;;  %v742_v10 = vld [vmem:[#allocation6 + $0x28] sm:$0xff]   ;;  %p138_p2 = scmp.ge.s32.totalorder %s141_s5, 8  }
 0x107   : > { %672 = vmatprep.subr.bf16.mxu1 %v829_v13  ;;  %v480_v6 = vld [vmem:[#allocation3 + $0x4] sm:$0x3]  ;;  %v478_v11 = vld [vmem:[#allocation2 + $0x4] sm:$0x3] }
 0x108   : > { %665 = vmatpush3.bf16.msra.mxu0 %v734_v14  ;;  %v481_v12 = vpack.c.bf16 %v478_v11, %v478_v11 }
 0x109   : > { %686 = vmatprep.subr.bf16.mxu0 %v829_v13 }
 0x10a   : > { %673 = vmatpush3.bf16.msra.mxu1 %v736_v35  ;;  %v586_v35 = vlaneseq }
 0x10b   : > { %667 = vmatmul.mubr.msk.bf16.vlgmr.msra.gmra.mrb[0].mxu0 %vm161_vm4, %v144_v16  ;;  %678 = vmatprep.subr.bf16.mxu1 %v829_v13 }
 0x10c   : > { %690 = vmatprep.mubr.msk.bf16.mxu0 %vm830_vm3, %v829_v13  ;;  %687 = vmatpush3.bf16.msra.mxu0 %v739_v62 }
 0x10d   : > { %688 = vmatprep.subr.bf16.mxu0 %v829_v13 }
 0x110   : > { %689 = vmatpush3.bf16.msra.mxu0 %v740_v63 }
 0x111   : > { %694 = vmatprep.subr.bf16.mxu0 %v829_v13 }
 0x1de   : > { %v199_v17 = vpop.f32.mrb[0].mxu0 }
 0x1df   : > { %v205_v18 = vadd.f32 %v199_v17, %v919_v8  ;;  %v668_v19 = vpop.f32.mrb[1].mxu0 }
 0x1e0   : > { %v202_v20 = vpop.f32.mrb[2].mxu0 }
 0x1e1   : > { %743 = vtanh.f32 %v205_v18  ;;  %v669_v21 = vpop.f32.mrb[3].mxu0  ;;  %v624_v24 = vmul.f32 -1.442695, %v205_v18 }
 0x1e3   : > { %745 = vpow2.f32 %v624_v24 }
 0x1eb   : > { %v744_v22 = vpop.eup %743 }
 0x1ec   : > { %219 = vrot.lane.b32.xlu0 %v744_v22, %s831_s0 }
 0x1ed   : > { %v746_v25 = vpop.eup %745 }
 0x1ee   : > { %v209_v26 = vadd.f32 1.0, %v746_v25 }
 0x1f0   : > { %214 = vrot.lane.b32.xlu0 %v143_v23, %s832_s1  ;;  %747 = vrcp.f32 %v209_v26 }
 0x1fa   : > { %v748_v27 = vpop.eup %747 }
 0x25e   : > { %v220_v28 = vpop.permute.xlu0 %219 }
 0x25f   : > { %v222_v29 = vmul.f32 %v748_v27, %v220_v28 }
 0x261   : > { %224 = vrot.lane.b32.xlu1 %v222_v29, %s832_s1 }
 0x262   : > { %v215_v30 = vpop.permute.xlu0 %214 }
 0x263   : > { %v217_v31 = vmul.f32 %v748_v27, %v215_v30 }
 0x2d3   : > { %v225_v32 = vpop.permute.xlu1 %224 }
 0x2d4   : > { %v941_v33 = vadd.f32 %v225_v32, %v217_v31 }
 0x2d6   : > { %749 = vtanh.f32 %v941_v33 }
 0x2e0   : > { %v750_v36 = vpop.eup %749 }
 0x2e1   : > { %230 = vrot.lane.b32.xlu1 %v750_v36, %s831_s0 }
 0x353   : > { %v231_v37 = vpop.permute.xlu1 %230 }
 0x354   : > { %v947_v38 = vmul.f32 %v748_v27, %v231_v37  ;;  %v587_v37 = vshrl.u32 %v586_v35, 7 }
 0x356   : > { %v244_v39 = vpack.c.bf16 %v947_v38, %v947_v38 }
 0x358   : > { %250 = vrot.lane.b32.xlu0 %v244_v39, %s832_s1 }
 0x35c   : > { %382 = vrot.lane.b32.xlu0 %v311_v40, %s832_s1 }
 0x3ca   : > { %v251_v42 = vpop.permute.xlu0 %250 }
 0x3cb   : > { %675 = vmatmul.mubr.msk.bf16.vlgmr.msra.gmra.mrb[0].mxu1 %vm161_vm4, %v251_v42 }
 0x3cc   : > { %679 = vmatpush3.bf16.msra.mxu1 %v737_v41  ;;  %682 = vmatprep.mubr.msk.bf16.mxu1 %vm830_vm3, %v829_v13 }
 0x3cd   : > { %680 = vmatprep.subr.bf16.mxu1 %v829_v13 }
 0x3ce   : > { %v383_v58 = vpop.permute.xlu0 %382 }
 0x3d0   : > { %681 = vmatpush3.bf16.msra.mxu1 %v738_v43 }
 0x3d7   : > { %683 = vmatmul.mubr.msk.bf16.vlgmr.msra.gmra.mrb[0].mxu1 %vm161_vm4, %v312_v45 }
 0x4aa   : > { %v367_v46 = vpop.f32.mrb[0].mxu1 }
 0x4ab   : > { %v702_v47 = vadd.f32 %v903_v1, %v367_v46  ;;  %v684_v48 = vpop.f32.mrb[1].mxu1 }
 0x4ac   : > { %v370_v49 = vpop.f32.mrb[2].mxu1 }
 0x4ad   : > { %751 = vtanh.f32 %v702_v47  ;;  %v685_v50 = vpop.f32.mrb[3].mxu1  ;;  %v631_v52 = vmul.f32 -1.442695, %v702_v47 }
 0x4af   : > { %753 = vpow2.f32 %v631_v52 }
 0x4b7   : > { %v752_v51 = vpop.eup %751 }
 0x4b8   : > { %387 = vrot.lane.b32.xlu1 %v752_v51, %s831_s0 }
 0x4b9   : > { %v754_v53 = vpop.eup %753 }
 0x4ba   : > { %v377_v54 = vadd.f32 1.0, %v754_v53 }
 0x4bc   : > { %755 = vrcp.f32 %v377_v54 }
 0x4c6   : > { %v756_v55 = vpop.eup %755 }
 0x4c7   : > { %v385_v59 = vmul.f32 %v756_v55, %v383_v58 }
 0x52a   : > { %v388_v56 = vpop.permute.xlu1 %387 }
 0x52b   : > { %v390_v57 = vmul.f32 %v756_v55, %v388_v56 }
 0x52d   : > { %392 = vrot.lane.b32.xlu1 %v390_v57, %s832_s1 }
 0x59f   : > { %v393_v60 = vpop.permute.xlu1 %392 }
 0x5a0   : > { %v395_v61 = vadd.f32 %v393_v60, %v385_v59 }
 0x5a2   : > { %757 = vtanh.f32 %v395_v61 }
 0x5ac   : > { %v758_v0 = vpop.eup %757 }
 0x5ad   : > { %398 = vrot.lane.b32.xlu0 %v758_v0, %s831_s0 }
 0x61f   : > { %v399_v3 = vpop.permute.xlu0 %398 }
 0x620   : > { %v401_v4 = vmul.f32 %v756_v55, %v399_v3 }
 0x622   : > { %v412_v5 = vpack.c.bf16 %v401_v4, %v401_v4 }
 0x624   : > { %419 = vrot.lane.b32.xlu1 %v412_v5, %s832_s1 }
 0x628   : > { %551 = vrot.lane.b32.xlu1 %v480_v6, %s832_s1 }
 0x696   : > { %v420_v9 = vpop.permute.xlu1 %419 }
 0x697   : > { %691 = vmatmul.mubr.msk.bf16.vlgmr.msra.gmra.mrb[4].mxu0 %vm161_vm4, %v420_v9 }
 0x698   : > { %695 = vmatpush3.bf16.msra.mxu0 %v741_v7  ;;  %698 = vmatprep.mubr.msk.bf16.mxu0 %vm830_vm3, %v829_v13 }
 0x699   : > { %696 = vmatprep.subr.bf16.mxu0 %v829_v13 }
 0x69a   : > { %v552_v25 = vpop.permute.xlu1 %551 }
 0x69c   : > { %697 = vmatpush3.bf16.msra.mxu0 %v742_v10 }
 0x6a3   : > { %699 = vmatmul.mubr.msk.bf16.vlgmr.msra.gmra.mrb[4].mxu0 %vm161_vm4, %v481_v12 }
 0x776   : > { %v536_v14 = vpop.f32.mrb[4].mxu0 }
 0x777   : > { %v703_v15 = vadd.f32 %v908_v2, %v536_v14  ;;  %v700_v16 = vpop.f32.mrb[5].mxu0 }
 0x778   : > { %v539_v17 = vpop.f32.mrb[6].mxu0 }
 0x779   : > { %759 = vtanh.f32 %v703_v15  ;;  %v701_v18 = vpop.f32.mrb[7].mxu0  ;;  %v638_v20 = vmul.f32 -1.442695, %v703_v15 }
 0x77b   : > { %761 = vpow2.f32 %v638_v20 }
 0x783   : > { %v760_v19 = vpop.eup %759 }
 0x784   : > { %556 = vrot.lane.b32.xlu0 %v760_v19, %s831_s0 }
 0x785   : > { %v762_v21 = vpop.eup %761 }
 0x786   : > { %v546_v22 = vadd.f32 1.0, %v762_v21 }
 0x788   : > { %763 = vrcp.f32 %v546_v22 }
 0x792   : > { %v764_v13 = vpop.eup %763 }
 0x793   : > { %v554_v26 = vmul.f32 %v764_v13, %v552_v25 }
 0x7f6   : > { %v557_v23 = vpop.permute.xlu0 %556 }
 0x7f7   : > { %v559_v24 = vmul.f32 %v764_v13, %v557_v23 }
 0x7f9   : > { %561 = vrot.lane.b32.xlu0 %v559_v24, %s832_s1 }
 0x7fd   : > { %235 = vrot.lane.b32.xlu0 %v941_v33, %s833_s2  ;;  %v834_v33 = vmov 1966171168  }
 0x7fe   : > { %v584_v34 = vunpack.c.l.s4 %v834_v33 }
 0x800   : > { %v585_v36 = vunpack.c.0.s8 %v584_v34 }
 0x801   : > { %403 = vrot.lane.b32.xlu0 %v395_v61, %s833_s2 }
 0x802   : > { %v588_v40 = vsub.s32 %v585_v36, %v587_v37 }
 0x86b   : > { %v562_v27 = vpop.permute.xlu0 %561 }
 0x86c   : > { %v564_v28 = vadd.f32 %v562_v27, %v554_v26 }
 0x86e   : > { %765 = vtanh.f32 %v564_v28  ;;  %572 = vrot.lane.b32.xlu0 %v564_v28, %s833_s2 }
 0x86f   : > { %v236_v29 = vpop.permute.xlu0 %235 }
 0x870   : > { %238 = vst.msk [vmem:[#allocation3] sm:$0x3] %vm52_vm0, %v236_v29 }
 0x873   : > { %v404_v30 = vpop.permute.xlu0 %403 }
 0x874   : > { %406 = vst.msk [vmem:[#allocation3 + $0x2] sm:$0x3] %vm52_vm0, %v404_v30 }
 0x878   : > { %v766_v31 = vpop.eup %765 }
 0x879   : > { %567 = vrot.lane.b32.xlu1 %v766_v31, %s831_s0 }
 0x87d   : > { %240 = vrot.lane.b32.xlu1 %v947_v38, %s832_s1 }
 0x881   : > { %408 = vrot.lane.b32.xlu1 %v401_v4, %s832_s1 }
 0x8e0   : > { %v573_v32 = vpop.permute.xlu0 %572 }
 0x8e1   : > { %575 = vst.msk [vmem:[#allocation3 + $0x4] sm:$0x3] %vm52_vm0, %v573_v32 }
 0x8eb   : > { %v568_v39 = vpop.permute.xlu1 %567 }
 0x8ec   : > { %v570_v41 = vmul.f32 %v764_v13, %v568_v39 }
 0x8ee   : > { %v581_v42 = vpack.c.bf16 %v570_v41, %v570_v41  ;;  %577 = vrot.lane.b32.xlu1 %v570_v41, %s832_s1 }
 0x8ef   : > { %v241_v43 = vpop.permute.xlu1 %240 }
 0x8f0   : > { %v589_v44 = vrot.slane %v581_v42, %v588_v40  ;;  %243 = vst.msk [vmem:[#allocation2] sm:$0x3] %vm52_vm0, %v241_v43 }
 0x8f2   : > { %v596_v38 = vrot.slane %v589_v44, %v588_v40 }
 0x8f3   : > { %v409_v45 = vpop.permute.xlu1 %408 }
 0x8f4   : > { %411 = vst.msk [vmem:[#allocation2 + $0x2] sm:$0x3] %vm52_vm0, %v409_v45  ;;  %597 = vrot.lane.b32.xlu0 %v596_v38, %s832_s1 }
 0x960   : > { %v578_v46 = vpop.permute.xlu1 %577 }
 0x961   : > { %580 = vst.msk [vmem:[#allocation2 + $0x4] sm:$0x3] %vm52_vm0, %v578_v46  ;;  %140 = sbr.rel (!%p138_p2) target bundleno = 258 (0x102), region = 68 }
 0x966   : > { %v598_v47 = vpop.permute.xlu0 %597 }
 0x967   : > { %602 = vst.msk [vmem:[%s600_s9] sm:$0x1] %vm601_vm5, %v598_v47 }
 0x968   :  { %607 = vsyncpa [#allocation5], 1 }
 0x969   :  { %608 = vsyncpa [#allocation7], 1 }

</bundles_post_ra>
